<compile_context>
chip_gen: v6e
topology: v6e:2x2x1
jax: 0.10.0
libtpu: 0.0.40
codegen_flags: <defaults>
</compile_context>

<pallas_src>
import math

import jax
import jax.numpy as jnp
from jax.experimental import pallas as pl
from jax.experimental.pallas import tpu as pltpu


def _down_sample_kernel(x_ref, w_ref, b_ref, o_ref):
    # x_ref: (1, TH, 2, Wo, 2C)  NHWC tile: row-parity as a major dim, (col-parity, C) on lanes
    # w_ref: (C, 2C)             fused weight  [W_eff | W_eff] * 0.25 * bn_scale
    # b_ref: (C, 1)              fused bias    (conv_b - bn_mean) * bn_scale + bn_beta   (f32)
    # o_ref: (1, C, TS)          TS = TH*Wo output pixels on lanes (lane-dense store)
    even = x_ref[0, :, 0, :, :]                   # (TH, Wo, 2C)  input rows 2i
    odd = x_ref[0, :, 1, :, :]                    # (TH, Wo, 2C)  input rows 2i+1
    s = even + odd                                # row-pair sum (VPU)
    s2 = s.reshape(-1, s.shape[-1])               # (TS, 2C); free collapse when Wo % 8 == 0
    # MXU: column-pair pooling + 1x1 conv + BN scale in one matmul, contracting 2C on both
    # operands ("NT" form, like q @ k.T) -> output (C, TS): channels on sublanes, pixels on
    # lanes, so the store is lane-dense and the output is already NCHW-ordered.
    y = jax.lax.dot_general(w_ref[...], s2,
                            dimension_numbers=(((1,), (1,)), ((), ())),
                            preferred_element_type=jnp.float32)
    y = y + b_ref[...]                            # (C, 1) broadcast over TS lanes
    o_ref[0] = jnp.maximum(y, 0.0).astype(o_ref.dtype)   # ReLU


def _pick_row_tile(N, Ho, Wo, lanes, itemsize, target_block_bytes=2 << 20, min_steps=8):
    """Pick the output-row tile TH.

    Constraints / goals:
      * TS = TH*Wo must be a multiple of 128 (output block-shape legality + unmasked vst),
        unless TH == Ho (full-extent block, always legal).
      * The input block (TH, 2, Wo, lanes) stays <= target_block_bytes, so double-buffered
        input + row-sum temp + f32 accumulator + double-buffered output stay comfortably
        inside the default scoped-VMEM limits (16 MiB v5e / 32 MiB v6e / 32 MiB v7x).
      * At least ~min_steps total grid steps when the shape allows it (DMA pipelining, and
        both v7x TensorCores get work even when N == 1).
    Ho need NOT be a multiple of TH: the last row tile may be partial (Pallas masks it).
    """
    th0 = 128 // math.gcd(Wo, 128)                 # smallest TH giving TS % 128 == 0
    if th0 >= Ho:
        return Ho                                  # single full-extent row tile (TS == S)
    lane_pad = pl.cdiv(lanes, 128) * 128
    bytes_per_out_row = 2 * Wo * lane_pad * itemsize   # 2 input rows per output row
    cap = max(1, target_block_bytes // bytes_per_out_row)
    th = max(th0, (min(cap, Ho) // th0) * th0)
    # shrink toward the minimal lane-dense tile until there are enough grid steps
    while th > th0 and N * pl.cdiv(Ho, th) < min_steps:
        th = max(th0, ((th // 2) // th0) * th0)
    return th


def down_sample_forward(x_nchw, conv_w, conv_b, bn_gamma, bn_beta, bn_mean, bn_var,
                        eps=1e-5, act_dtype=jnp.bfloat16):
    """Forward pass of `down_sample`: (N, C, H, W) -> (N, C, H//2, W//2).

    Activations travel through the kernel in `act_dtype` (bf16 default: the op is HBM-bound,
    this halves input traffic).  Matmul accumulation is f32; the output is stored in x's dtype.
    """
    N, C, H, W = x_nchw.shape
    assert H % 2 == 0 and W % 2 == 0, "even H, W required (bilinear/2 == 2x2 avg pool)"
    Ho, Wo = H // 2, W // 2
    S = Ho * Wo
    out_dtype = x_nchw.dtype

    # ---- parameter folding (in f32, rounded to act_dtype exactly once) ----
    scale = (bn_gamma / jnp.sqrt(bn_var + eps)).astype(jnp.float32)        # (C,)
    w2 = conv_w[:, :, 0, 0].astype(jnp.float32)                            # (Cout, Cin)
    w_eff = w2 * scale[:, None] * 0.25                                     # BN scale + pool factor
    w_cat = jnp.concatenate([w_eff, w_eff], axis=1).astype(act_dtype)      # (Cout, 2Cin): [even|odd cols]
    b_eff = ((conv_b - bn_mean) * scale + bn_beta).reshape(C, 1).astype(jnp.float32)

    # ---- layout: ONE XLA transpose on the input; everything else is a free reshape ----
    # TODO(synk): an NHWC-native caller could pass (N, H, W, C) directly and drop this
    # transpose (the only remaining extra HBM pass).
    xh = jnp.transpose(x_nchw, (0, 2, 3, 1)).astype(act_dtype)             # (N, H, W, C)
    xv = xh.reshape(N, Ho, 2, Wo, 2 * C)              # row pairs major; (col-parity, C) on lanes

    # ---- spatial tiling ----
    TH = _pick_row_tile(N, Ho, Wo, 2 * C, jnp.dtype(act_dtype).itemsize)
    TS = TH * Wo
    rows = pl.cdiv(Ho, TH)

    out = pl.pallas_call(
        _down_sample_kernel,
        out_shape=jax.ShapeDtypeStruct((N, C, S), out_dtype),
        grid=(N, rows),
        in_specs=[
            pl.BlockSpec((1, TH, 2, Wo, 2 * C), lambda n, r: (n, r, 0, 0, 0)),
            pl.BlockSpec((C, 2 * C), lambda n, r: (0, 0)),   # constant index -> VMEM-resident
            pl.BlockSpec((C, 1), lambda n, r: (0, 0)),
        ],
        out_specs=pl.BlockSpec((1, C, TS), lambda n, r: (n, 0, r)),
        compiler_params=pltpu.CompilerParams(
            dimension_semantics=("parallel", "parallel")),
    )(xv, w_cat, b_eff)

    # (N, C, S) -> (N, C, Ho, Wo): free reshape, no output transpose needed.
    return out.reshape(N, C, Ho, Wo)


def _reference(x_nchw, conv_w, conv_b, bn_gamma, bn_beta, bn_mean, bn_var, eps=1e-5):
    """Pure-JAX reference (2x2 avg pool + 1x1 conv + BN(eval) + ReLU) for verification."""
    N, C, H, W = x_nchw.shape
    Ho, Wo = H // 2, W // 2
    xp = x_nchw.reshape(N, C, Ho, 2, Wo, 2).mean(axis=(3, 5))              # (N, C, Ho, Wo)
    y = jnp.einsum("oc,nchw->nohw", conv_w[:, :, 0, 0], xp) + conv_b[None, :, None, None]
    scale = bn_gamma / jnp.sqrt(bn_var + eps)
    y = (y - bn_mean[None, :, None, None]) * scale[None, :, None, None] + bn_beta[None, :, None, None]
    return jnp.maximum(y, 0.0)


if __name__ == "__main__":
    N, C, H, W = 2, 96, 16, 16          # channels=96 matches the module default

    key = jax.random.PRNGKey(0)
    k_x, k_w, k_b, k_g, k_be, k_m, k_v = jax.random.split(key, 7)

    x = jax.random.normal(k_x, (N, C, H, W), dtype=jnp.float32)

    # deterministic synthetic parameters (shapes follow nn.Conv2d(C, C, 1) + nn.BatchNorm2d(C))
    conv_w = jax.random.normal(k_w, (C, C, 1, 1), dtype=jnp.float32) * 0.1
    conv_b = jax.random.normal(k_b, (C,), dtype=jnp.float32) * 0.1
    bn_gamma = 1.0 + 0.1 * jax.random.normal(k_g, (C,), dtype=jnp.float32)
    bn_beta = 0.1 * jax.random.normal(k_be, (C,), dtype=jnp.float32)
    bn_mean = 0.1 * jax.random.normal(k_m, (C,), dtype=jnp.float32)
    bn_var = jnp.abs(jax.random.normal(k_v, (C,), dtype=jnp.float32)) + 0.5

    ref = _reference(x, conv_w, conv_b, bn_gamma, bn_beta, bn_mean, bn_var)

    # default (bf16 activation) path
    out_bf16 = down_sample_forward(x, conv_w, conv_b, bn_gamma, bn_beta, bn_mean, bn_var)
    out_bf16 = jax.block_until_ready(out_bf16)
    assert out_bf16.shape == (N, C, H // 2, W // 2)
    assert jnp.allclose(out_bf16, ref, rtol=3e-2, atol=3e-2), "bf16 path mismatch vs reference"

    # full-precision path (tight tolerance sanity check of the kernel math)
    out_f32 = down_sample_forward(x, conv_w, conv_b, bn_gamma, bn_beta, bn_mean, bn_var,
                                  act_dtype=jnp.float32)
    out_f32 = jax.block_until_ready(out_f32)
    assert jnp.allclose(out_f32, ref, rtol=1e-4, atol=1e-4), "f32 path mismatch vs reference"

    print("KERNEL_OK")
</pallas_src>

<mosaic_0001>
module attributes {stable_mosaic.version = 11 : i64} {
  func.func @_down_sample_kernel(%arg0: i32, %arg1: i32, %arg2: memref<1x8x2x8x192xbf16, #tpu.memory_space<vmem>>, %arg3: memref<96x192xbf16, #tpu.memory_space<vmem>>, %arg4: memref<96x1xf32, #tpu.memory_space<vmem>>, %arg5: memref<1x96x64xf32, #tpu.memory_space<vmem>>) attributes {dimension_semantics = [#tpu.dimension_semantics<parallel>, #tpu.dimension_semantics<parallel>], iteration_bounds = array<i64: 2, 1>, scalar_prefetch = 0 : i64, scratch_operands = 0 : i64, tpu.core_type = #tpu.core_type<tc>, window_params = [{transform_indices = @transform_0, window_bounds = array<i64: 1, 8, 2, 8, 192>}, {pipeline_mode = #tpu.pipeline_mode<synchronous>, transform_indices = @transform_1, window_bounds = array<i64: 96, 192>}, {pipeline_mode = #tpu.pipeline_mode<synchronous>, transform_indices = @transform_2, window_bounds = array<i64: 96, 1>}, {transform_indices = @transform_3, window_bounds = array<i64: 1, 96, 64>}]} {
    %c0 = arith.constant 0 : index
    %c0_0 = arith.constant 0 : index
    %c0_1 = arith.constant 0 : index
    %c0_2 = arith.constant 0 : index
    %c0_3 = arith.constant 0 : index
    %0 = vector.load %arg2[%c0, %c0_0, %c0_1, %c0_2, %c0_3] : memref<1x8x2x8x192xbf16, #tpu.memory_space<vmem>>, vector<1x8x1x8x192xbf16>
    %1 = vector.shape_cast %0 : vector<1x8x1x8x192xbf16> to vector<8x8x192xbf16>
    %c0_4 = arith.constant 0 : index
    %c0_5 = arith.constant 0 : index
    %c1 = arith.constant 1 : index
    %c0_6 = arith.constant 0 : index
    %c0_7 = arith.constant 0 : index
    %2 = vector.load %arg2[%c0_4, %c0_5, %c1, %c0_6, %c0_7] : memref<1x8x2x8x192xbf16, #tpu.memory_space<vmem>>, vector<1x8x1x8x192xbf16>
    %3 = vector.shape_cast %2 : vector<1x8x1x8x192xbf16> to vector<8x8x192xbf16>
    %4 = arith.addf %1, %3 : vector<8x8x192xbf16>
    %5 = vector.shape_cast %4 : vector<8x8x192xbf16> to vector<64x192xbf16>
    %c0_8 = arith.constant 0 : index
    %c0_9 = arith.constant 0 : index
    %6 = vector.load %arg3[%c0_8, %c0_9] : memref<96x192xbf16, #tpu.memory_space<vmem>>, vector<96x192xbf16>
    %cst = arith.constant dense<0.000000e+00> : vector<96x64xf32>
    %7 = tpu.matmul %6, %5, %cst {dimension_numbers = #tpu.dot_dimension_numbers<[1], [1], [0], [0], [0, 0, 1, 0], [], []>} : vector<96x192xbf16>, vector<64x192xbf16>, vector<96x64xf32> -> vector<96x64xf32>
    %c0_10 = arith.constant 0 : index
    %c0_11 = arith.constant 0 : index
    %8 = vector.load %arg4[%c0_10, %c0_11] : memref<96x1xf32, #tpu.memory_space<vmem>>, vector<96x1xf32>
    %9 = vector.broadcast %8 : vector<96x1xf32> to vector<96x64xf32>
    %10 = arith.addf %7, %9 : vector<96x64xf32>
    %cst_12 = arith.constant 0.000000e+00 : f32
    %11 = vector.broadcast %cst_12 : f32 to vector<96x64xf32>
    %12 = arith.maximumf %10, %11 : vector<96x64xf32>
    %c0_13 = arith.constant 0 : index
    %c0_14 = arith.constant 0 : index
    %c0_15 = arith.constant 0 : index
    %13 = vector.load %arg5[%c0_13, %c0_14, %c0_15] : memref<1x96x64xf32, #tpu.memory_space<vmem>>, vector<1x96x64xf32>
    %14 = vector.shape_cast %13 : vector<1x96x64xf32> to vector<96x64xf32>
    %15 = vector.shape_cast %12 : vector<96x64xf32> to vector<1x96x64xf32>
    tpu.vector_store %arg5[%c0_13, %c0_14, %c0_15], %15 {strides = array<i32>} : memref<1x96x64xf32, #tpu.memory_space<vmem>>, vector<1x96x64xf32>,
    return
  }
  func.func @transform_0(%arg0: i32, %arg1: i32) -> (i32, i32, i32, i32, i32) {
    %c0_i32 = arith.constant 0 : i32
    %c0_i32_0 = arith.constant 0 : i32
    %c0_i32_1 = arith.constant 0 : i32
    %c0_i32_2 = arith.constant 0 : i32
    return %arg0, %arg1, %c0_i32, %c0_i32_0, %c0_i32_1 : i32, i32, i32, i32, i32
  }
  func.func @transform_1(%arg0: i32, %arg1: i32) -> (i32, i32) {
    %c0_i32 = arith.constant 0 : i32
    %c0_i32_0 = arith.constant 0 : i32
    %c0_i32_1 = arith.constant 0 : i32
    return %c0_i32, %c0_i32_0 : i32, i32
  }
  func.func @transform_2(%arg0: i32, %arg1: i32) -> (i32, i32) {
    %c0_i32 = arith.constant 0 : i32
    %c0_i32_0 = arith.constant 0 : i32
    %c0_i32_1 = arith.constant 0 : i32
    return %c0_i32, %c0_i32_0 : i32, i32
  }
  func.func @transform_3(%arg0: i32, %arg1: i32) -> (i32, i32, i32) {
    %c0_i32 = arith.constant 0 : i32
    %c0_i32_0 = arith.constant 0 : i32
    return %arg0, %c0_i32, %arg1 : i32, i32, i32
  }
}

</mosaic_0001>

<bundles_post_ra>
// kernel: tpu_custom_call.1
= control target key start
LH: loop header
LB: loop body
LE: loop exit
PB: predicated region body
PF: predicated region fallthrough
CT: control target
= control target key end

     0   :  { %8 = vsyncpa [#allocation3], 0  ;;  %s1113_s0 = inlined_call_operand.hbm [shape: bf16[2,8,2,8,192], index: 0, kind: input, shape index: {}]   ;;  %s1114_s1 = inlined_call_operand.vmem [shape: bf16[96,192], index: 1, kind: input, shape index: {}]   ;;  %s1115_s2 = inlined_call_operand.vmem [shape: f32[96,1], index: 2, kind: input, shape index: {}]   ;;  %s1116_s3 = inlined_call_operand.vmem [shape: f32[2,96,64], index: 3, kind: output, shape index: {}]  }
   0x1   :  { %10 = vsyncpa [#allocation3 + $0x1], 0  ;;  %s887_s12 = smov 0   ;;  %s889_s13 = smov 0  }
   0x2   :  { %s891_s14 = smov 0   ;;  %s893_s15 = smov 0  }
   0x3   :  { %s895_s16 = smov 0   ;;  %s897_s17 = smov 0  }
   0x4 LB: > { %s645_s18 = sadd.s32 4294967295, %s861_s17   ;;  %s28_s19 = sadd.s32 1, %s857_s16  ;;  %s861_s17 = sphi %s897_s17, %s16_s17   ;;  %s857_s16 = sphi %s895_s16, %s1124_s16   ;;  %s853_s15 = sphi %s893_s15, %s1123_s15   ;;  %s849_s14 = sphi %s891_s14, %s1122_s14   ;;  %s845_s13 = sphi %s889_s13, %s1121_s13   ;;  %s841_s12 = sphi %s887_s12, %s1120_s12  }
   0x5   : > { %p30_p0 = scmp.ge.s32.totalorder %s28_s19, 2  ;;  %s37_s20 = sadd.s32 1, %s849_s14 }
   0x6   : > { %p44_p1 = scmp.ne.s32.totalorder %s849_s14, %s845_s13  ;;  %p45_p2 = scmp.eq.s32.totalorder %s861_s17, 0 }
   0x7   : > { %s1126_s19 = smov (%p30_p0, %s28_s19), 0  ;;  %p50_p4 = scmp.ne.s32.totalorder %s845_s13, %s841_s12 }
   0x8   : > { %p923_p3 = por %p45_p2, %p44_p1  ;;  %s32_s22 = ssub.s32 %s857_s16, %s1126_s19 }
   0x9   : > { %p51_p5 = scmp.eq.s32.totalorder %s645_s18, 0  ;;  %p35_p6 = scmp.eq.s32.totalorder %s32_s22, 0 }
   0xa   : > { %p711_p8 = scmp.lt.s32.totalorder %s861_s17, 2  ;;  %s150_s25 = sand.u32 1, %s849_s14  }
   0xb   : > { %p930_p7 = por %p51_p5, %p50_p4  ;;  %s695_s26 = sshll.u32 %s857_s16, 11 }
   0xc   : > { %s936_s24 = scalar_select %p35_p6, %s849_s14, %s37_s20  }
   0xd   : > { %s649_s27 = sshll.u32 %s150_s25, 7  ;;  %s163_s30 = scalar_lea.hbm %s1113_s0, %s695_s26 }
   0xe   : > { %s154_s4 = scalar_lea.vmem [#allocation2], %s649_s27  ;;  %p945_p9 = pnand %p711_p8, %p923_p3 }
   0xf   : > { %s164_s5 = sshll.u32 %s154_s4, 4  ;;  %s151_s7 = scalar_lea.sflag [#allocation3], %s150_s25  ;;  %s165_s5 = int_to_ptr.vmem [resolvable:$true] %s164_s5 }
  0x10   : > { %p785_p10 = pneg %p945_p9  ;;  %s796_s8 = scalar_lea.vmem %s165_s5, 2048 }
  0x11   : > { %p797_p11 = scmp.ne.s32.totalorder %s165_s5, %s796_s8  ;;  %s863_s9 = smov [#allocation2]  }
  0x12   : > { %s801_s10 = sshll.u32 %s863_s9, 4  ;;  %s802_s10 = int_to_ptr.vmem [resolvable:$false] %s801_s10 }
  0x13   : > { %p799_p12 = pnand %p797_p11, %p785_p10  ;;  %s803_s11 = scalar_lea.vmem %s802_s10, 4096 }
  0x14   : > { %p804_p0 = scmp.lt.s32.totalorder %s165_s5, %s802_s10  ;;  %p805_p1 = scmp.lt.s32.totalorder %s803_s11, %s796_s8 }
  0x15   : > { %p800_p13 = pneg %p799_p12 }
  0x16   : > { %p806_p2 = por %p805_p1, %p804_p0 }
  0x18   : > { %p807_p3 = pnand %p806_p2, %p800_p13 }
  0x1a   : > { %810 = shalt.err (!%p807_p3)
}
  0x1b   : > { %s864_s12 = smov 128   ;;  %s865_s18 = smov 8  }
  0x1c   : > { %710 = dma.hbm_to_vmem [thread:$0]  (!%p945_p9), %s163_s30, 2048, %s165_s5, %s151_s7, %s864_s12, %s864_s12, %s865_s18  }
  0x1d   : > { %p652_p4 = scmp.ge.s32.totalorder %s861_s17, 1  ;;  %p172_p5 = scmp.lt.s32.totalorder %s861_s17, 3 }
  0x1f   : > { %p173_p6 = pnand %p652_p4, %p172_p5 }
  0x20   : > { %s178_s20 = sand.u32 (!%p173_p6), 1, %s845_s13  }
  0x21   : > { %176 = sbr.rel (%p173_p6) target bundleno = 295 (0x127), region = 32  ;;  %s653_s21 = sshll.u32 (!%p173_p6), %s178_s20, 7 }
  0x22   : > { %s179_s22 = scalar_lea.sflag (!%p173_p6), [#allocation3], %s178_s20  ;;  %s956_s25 = scalar_lea.vmem (!%p173_p6), [#allocation2], %s653_s21 }
  0x26   : > { %836 = dma.done.wait (%p930_p7), %s179_s22, 2048  }
  0x27   : > { %838 = vsyncadd (%p930_p7), %s179_s22, 4294965248  ;;  %v866_v0 = vmov 0   ;;  %v224_v1 = vld [vmem:[%s956_s25 + $0x60] sm:$0xff]  ;;  %v225_v2 = vld [vmem:[%s956_s25 + $0x70] sm:$0xff]  ;;  %vm417_vm0 = vcmask 523264   ;;  %p209_p7 = scmp.lt.s32.totalorder %s853_s15, 1 }
  0x28   : > { %764 = vset.pattern.permute.xlu1 %v866_v0  ;;  %763 = vset.pattern.permute.xlu0 %v866_v0  ;;  %v661_v3 = vld [vmem:[%s956_s25 + $0x68] sm:$0xff]  ;;  %v662_v4 = vld [vmem:[%s956_s25 + $0x78] sm:$0xff]  ;;  %v222_v6 = vld [vmem:[%s956_s25 + $0x40] sm:$0xff] }
  0x29   : > { %v241_v5 = vadd.bf16 %v661_v3, %v224_v1  ;;  %v223_v7 = vld [vmem:[%s956_s25 + $0x50] sm:$0xff]  ;;  %v242_v8 = vadd.bf16 %v662_v4, %v225_v2  ;;  %v659_v9 = vld [vmem:[%s956_s25 + $0x48] sm:$0xff]  ;;  %v660_v10 = vld [vmem:[%s956_s25 + $0x58] sm:$0xff]  ;;  %s1128_s15 = smov (!%p209_p7, %s853_s15), 1 }
  0x2a   : > { %v239_v11 = vadd.bf16 %v659_v9, %v222_v6  ;;  %v240_v12 = vadd.bf16 %v660_v10, %v223_v7  ;;  %v220_v15 = vld [vmem:[%s956_s25 + $0x20] sm:$0xff]  ;;  %v221_v16 = vld [vmem:[%s956_s25 + $0x30] sm:$0xff]  ;;  %v657_v17 = vld [vmem:[%s956_s25 + $0x28] sm:$0xff]  ;;  %s704_s6 = smul.u32 96, %s1128_s15 }
  0x2b   : > { %v682_v13 = vcombine.high %v241_v5, %v242_v8  ;;  %v681_v14 = vcombine.low %v241_v5, %v242_v8  ;;  %v658_v19 = vld [vmem:[%s956_s25 + $0x38] sm:$0xff]  ;;  %v767_v20 = vld [vmem:[%s1114_s1 + $0x4] ss:$8 sps:$4 sm:$0xff]   ;;  %v237_v22 = vadd.bf16 %v657_v17, %v220_v15  ;;  %v219_v27 = vld [vmem:[%s956_s25 + $0x10] sm:$0xff] }
  0x2c   : > { %v680_v18 = vcombine.high %v239_v11, %v240_v12  ;;  %v770_v21 = vld [vmem:[%s1114_s1 + $0x34] ss:$8 sps:$4 sm:$0xff]   ;;  %v238_v23 = vadd.bf16 %v658_v19, %v221_v16  ;;  %687 = vmatprep.mubr.msk.bf16.mxu0 %vm417_vm0, %v767_v20  ;;  %v679_v24 = vcombine.low %v239_v11, %v240_v12  ;;  %v218_v25 = vld [vmem:[%s956_s25] sm:$0xff]  ;;  %v655_v28 = vld [vmem:[%s956_s25 + $0x8] sm:$0xff]  ;;  %s1069_s9 = scalar_lea.vmem %s1116_s3, %s704_s6 }
  0x2d   : > { %683 = vmatprep.subr.msk.bf16.mxu0 %vm417_vm0, %v682_v13  ;;  %696 = vmatprep.subr.msk.bf16.mxu1 %vm417_vm0, %v682_v13  ;;  %v656_v29 = vld [vmem:[%s956_s25 + $0x18] sm:$0xff]  ;;  %v257_v30 = vld [vmem:[%s1115_s2 + $0x10] sm:$0xff]  ;;  %v255_v31 = vld [vmem:[%s1115_s2] sm:$0xff]  ;;  %v235_v34 = vadd.bf16 %v655_v28, %v218_v25 }
  0x2e   : > { %457 = vmatpush1.bf16.xpose.msra.mxu0 %v681_v14  ;;  %700 = vmatpush1.bf16.xpose.msra.mxu1 %v681_v14  ;;  %v678_v26 = vcombine.high %v237_v22, %v238_v23  ;;  %v258_v32 = vld [vmem:[%s1115_s2 + $0x18] sm:$0xff]  ;;  %v256_v33 = vld [vmem:[%s1115_s2 + $0x8] sm:$0xff]  ;;  %v236_v35 = vadd.bf16 %v656_v29, %v219_v27  ;;  %v677_v36 = vcombine.low %v237_v22, %v238_v23  ;;  %v259_v38 = vld [vmem:[%s1115_s2 + $0x20] sm:$0xff] }
  0x2f   : > { %684 = vmatprep.subr.msk.bf16.mxu0 %vm417_vm0, %v680_v18  ;;  %697 = vmatprep.subr.msk.bf16.mxu1 %vm417_vm0, %v680_v18  ;;  %v260_v37 = vld [vmem:[%s1115_s2 + $0x28] sm:$0xff]  ;;  %v262_v40 = vld [vmem:[%s1115_s2 + $0x38] sm:$0xff]  ;;  %v261_v41 = vld [vmem:[%s1115_s2 + $0x30] sm:$0xff] }
  0x30   : > { %690 = vmatprep.mubr.msk.bf16.mxu1 %vm417_vm0, %v770_v21  ;;  %279 = vperm.xlu1 %764, %v257_v30   ;;  %v676_v39 = vcombine.high %v235_v34, %v236_v35  ;;  %v675_v42 = vcombine.low %v235_v34, %v236_v35  ;;  %v264_v43 = vld [vmem:[%s1115_s2 + $0x48] sm:$0xff]  ;;  %v263_v44 = vld [vmem:[%s1115_s2 + $0x40] sm:$0xff]  ;;  %v266_v45 = vld [vmem:[%s1115_s2 + $0x58] sm:$0xff] }
  0x31   : > { %269 = vperm.xlu0 %763, %v255_v31   ;;  %v265_v46 = vld [vmem:[%s1115_s2 + $0x50] sm:$0xff]  ;;  %v765_v47 = vld [vmem:[%s1114_s1] ss:$8 sps:$4 sm:$0xff]   ;;  %v773_v50 = vld [vmem:[%s1114_s1 + $0x44] ss:$8 sps:$4 sm:$0xff]  }
  0x32   : > { %v768_v48 = vld [vmem:[%s1114_s1 + $0x30] ss:$8 sps:$4 sm:$0xff]   ;;  %v771_v49 = vld [vmem:[%s1114_s1 + $0x14] ss:$8 sps:$4 sm:$0xff]   ;;  %v776_v52 = vld [vmem:[%s1114_s1 + $0x40] ss:$8 sps:$4 sm:$0xff]  }
  0x33   : > { %v775_v51 = vld [vmem:[%s1114_s1 + $0x10] ss:$8 sps:$4 sm:$0xff]   ;;  %v777_v53 = vld [vmem:[%s1114_s1 + $0x24] ss:$8 sps:$4 sm:$0xff]   ;;  %v779_v54 = vld [vmem:[%s1114_s1 + $0x54] ss:$8 sps:$4 sm:$0xff]  }
  0x34   : > { %284 = vperm.xlu1 %764, %v258_v32   ;;  %v781_v55 = vld [vmem:[%s1114_s1 + $0x20] ss:$8 sps:$4 sm:$0xff]   ;;  %v782_v56 = vld [vmem:[%s1114_s1 + $0x50] ss:$8 sps:$4 sm:$0xff]  }
  0x35   : > { %274 = vperm.xlu0 %763, %v256_v33  }
  0x36   : > { %459 = vmatpush1.bf16.xpose.msra.mxu0 %v679_v24  ;;  %701 = vmatpush1.bf16.xpose.msra.mxu1 %v679_v24 }
  0x37   : > { %685 = vmatprep.subr.msk.bf16.mxu0 %vm417_vm0, %v678_v26  ;;  %698 = vmatprep.subr.msk.bf16.mxu1 %vm417_vm0, %v678_v26 }
  0x38   : > { %294 = vperm.xlu1 %764, %v260_v37  }
  0x39   : > { %289 = vperm.xlu0 %763, %v259_v38  }
  0x3c   : > { %304 = vperm.xlu1 %764, %v262_v40  }
  0x3d   : > { %299 = vperm.xlu0 %763, %v261_v41  }
  0x3e   : > { %461 = vmatpush1.bf16.xpose.msra.mxu0 %v677_v36  ;;  %702 = vmatpush1.bf16.xpose.msra.mxu1 %v677_v36 }
  0x3f   : > { %686 = vmatprep.subr.msk.bf16.mxu0 %vm417_vm0, %v676_v39  ;;  %699 = vmatprep.subr.msk.bf16.mxu1 %vm417_vm0, %v676_v39 }
  0x40   : > { %314 = vperm.xlu1 %764, %v264_v43  }
  0x41   : > { %309 = vperm.xlu0 %763, %v263_v44  }
  0x44   : > { %324 = vperm.xlu1 %764, %v266_v45  }
  0x45   : > { %319 = vperm.xlu0 %763, %v265_v46  }
  0x46   : > { %463 = vmatpush1.bf16.xpose.msra.mxu0 %v675_v42  ;;  %703 = vmatpush1.bf16.xpose.msra.mxu1 %v675_v42 }
  0x4d   : > { %481 = vmatmul.mubr.bf16.vlgmr.msra.gmra.mxu0 %v765_v47  ;;  %505 = vmatmul.mubr.bf16.vlgmr.msra.gmra.mxu1 %v768_v48 }
  0x4e   : > { %688 = vmatprep.mubr.msk.bf16.mxu0 %vm417_vm0, %v771_v49  ;;  %691 = vmatprep.mubr.msk.bf16.mxu1 %vm417_vm0, %v773_v50 }
  0x55   : > { %489 = vmatmul.mubr.bf16.gmra.mxu0 %v775_v51  ;;  %513 = vmatmul.mubr.bf16.gmra.mxu1 %v776_v52 }
  0x56   : > { %689 = vmatprep.mubr.msk.bf16.mxu0 %vm417_vm0, %v777_v53  ;;  %692 = vmatprep.mubr.msk.bf16.mxu1 %vm417_vm0, %v779_v54 }
  0x5d   : > { %497 = vmatmul.mubr.bf16.gmra.mxu0 %v781_v55  ;;  %521 = vmatmul.mubr.bf16.gmra.mxu1 %v782_v56 }
  0xab   : > { %v280_v58 = vpop.permute.xlu1 %279 }
  0xac   : > { %v270_v57 = vpop.permute.xlu0 %269 }
  0xaf   : > { %v285_v60 = vpop.permute.xlu1 %284 }
  0xb0   : > { %v275_v59 = vpop.permute.xlu0 %274 }
  0xb3   : > { %v295_v62 = vpop.permute.xlu1 %294 }
  0xb4   : > { %v290_v61 = vpop.permute.xlu0 %289 }
  0xb7   : > { %v305_v6 = vpop.permute.xlu1 %304 }
  0xb8   : > { %v300_v63 = vpop.permute.xlu0 %299 }
  0xbb   : > { %v315_v24 = vpop.permute.xlu1 %314 }
  0xbc   : > { %v310_v15 = vpop.permute.xlu0 %309 }
  0xbf   : > { %v325_v42 = vpop.permute.xlu1 %324 }
  0xc0   : > { %v320_v33 = vpop.permute.xlu0 %319 }
 0x10d   : > { %v482_v0 = vpop.f32.mrf.mxu0  ;;  %v506_v1 = vpop.f32.mrf.mxu1 }
 0x10e   : > { %v483_v2 = vadd.f32 %v482_v0, %v270_v57  ;;  %v507_v3 = vadd.f32 %v506_v1, %v300_v63 }
 0x10f   : > { %v484_v4 = vpop.f32.mrf.mxu0  ;;  %v508_v5 = vpop.f32.mrf.mxu1 }
 0x110   : > { %v529_v7 = vmax.f32 %v483_v2, 0.0  ;;  %v535_v8 = vmax.f32 %v507_v3, 0.0 }
 0x111   : > { %v485_v9 = vpop.f32.mrf.mxu0  ;;  %v509_v10 = vpop.f32.mrf.mxu1 }
 0x112   : > { %541 = vst.msk [vmem:[%s1069_s9] sm:$0xff] %vm417_vm0, %v529_v7  ;;  %547 = vst.msk [vmem:[%s1069_s9 + $0x30] sm:$0xff] %vm417_vm0, %v535_v8  ;;  %v486_v11 = vadd.f32 %v485_v9, %v275_v59  ;;  %v510_v12 = vadd.f32 %v509_v10, %v305_v6 }
 0x113   : > { %v487_v13 = vpop.f32.mrf.mxu0  ;;  %v511_v14 = vpop.f32.mrf.mxu1 }
 0x114   : > { %v530_v16 = vmax.f32 %v486_v11, 0.0  ;;  %v536_v17 = vmax.f32 %v510_v12, 0.0 }
 0x115   : > { %v490_v18 = vpop.f32.mrf.mxu0  ;;  %v514_v19 = vpop.f32.mrf.mxu1 }
 0x116   : > { %542 = vst.msk [vmem:[%s1069_s9 + $0x8] sm:$0xff] %vm417_vm0, %v530_v16  ;;  %548 = vst.msk [vmem:[%s1069_s9 + $0x38] sm:$0xff] %vm417_vm0, %v536_v17  ;;  %v491_v20 = vadd.f32 %v490_v18, %v280_v58  ;;  %v515_v21 = vadd.f32 %v514_v19, %v310_v15 }
 0x117   : > { %v492_v22 = vpop.f32.mrf.mxu0  ;;  %v516_v23 = vpop.f32.mrf.mxu1 }
 0x118   : > { %v531_v25 = vmax.f32 %v491_v20, 0.0  ;;  %v537_v26 = vmax.f32 %v515_v21, 0.0 }
 0x119   : > { %v493_v27 = vpop.f32.mrf.mxu0  ;;  %v517_v28 = vpop.f32.mrf.mxu1 }
 0x11a   : > { %543 = vst.msk [vmem:[%s1069_s9 + $0x10] sm:$0xff] %vm417_vm0, %v531_v25  ;;  %549 = vst.msk [vmem:[%s1069_s9 + $0x40] sm:$0xff] %vm417_vm0, %v537_v26  ;;  %v494_v29 = vadd.f32 %v493_v27, %v285_v60  ;;  %v518_v30 = vadd.f32 %v517_v28, %v315_v24 }
 0x11b   : > { %v495_v31 = vpop.f32.mrf.mxu0  ;;  %v519_v32 = vpop.f32.mrf.mxu1 }
 0x11c   : > { %v532_v34 = vmax.f32 %v494_v29, 0.0  ;;  %v538_v35 = vmax.f32 %v518_v30, 0.0 }
 0x11d   : > { %v498_v36 = vpop.f32.mrf.mxu0  ;;  %v522_v37 = vpop.f32.mrf.mxu1 }
 0x11e   : > { %544 = vst.msk [vmem:[%s1069_s9 + $0x18] sm:$0xff] %vm417_vm0, %v532_v34  ;;  %550 = vst.msk [vmem:[%s1069_s9 + $0x48] sm:$0xff] %vm417_vm0, %v538_v35  ;;  %v499_v38 = vadd.f32 %v498_v36, %v290_v61  ;;  %v523_v39 = vadd.f32 %v522_v37, %v320_v33 }
 0x11f   : > { %v500_v40 = vpop.f32.mrf.mxu0  ;;  %v524_v41 = vpop.f32.mrf.mxu1 }
 0x120   : > { %v533_v43 = vmax.f32 %v499_v38, 0.0  ;;  %v539_v44 = vmax.f32 %v523_v39, 0.0 }
 0x121   : > { %v501_v45 = vpop.f32.mrf.mxu0  ;;  %v525_v46 = vpop.f32.mrf.mxu1 }
 0x122   : > { %545 = vst.msk [vmem:[%s1069_s9 + $0x20] sm:$0xff] %vm417_vm0, %v533_v43  ;;  %551 = vst.msk [vmem:[%s1069_s9 + $0x50] sm:$0xff] %vm417_vm0, %v539_v44  ;;  %v502_v47 = vadd.f32 %v501_v45, %v295_v62  ;;  %v526_v48 = vadd.f32 %v525_v46, %v325_v42 }
 0x123   : > { %v503_v49 = vpop.f32.mrf.mxu0  ;;  %v527_v50 = vpop.f32.mrf.mxu1 }
 0x124   : > { %v534_v51 = vmax.f32 %v502_v47, 0.0  ;;  %v540_v52 = vmax.f32 %v526_v48, 0.0 }
 0x126   : > { %546 = vst.msk [vmem:[%s1069_s9 + $0x28] sm:$0xff] %vm417_vm0, %v534_v51  ;;  %552 = vst.msk [vmem:[%s1069_s9 + $0x58] sm:$0xff] %vm417_vm0, %v540_v52 }
 0x127 PF: > { %s16_s17 = sadd.s32 1, %s861_s17   ;;  %s1120_s12 = smov %s845_s13 }
 0x128   : > { %p13_p8 = scmp.ge.s32.totalorder %s16_s17, 4   ;;  %s1121_s13 = smov %s849_s14 }
 0x129   : > { %s1122_s14 = smov %s936_s24  ;;  %s1123_s15 = smov %s857_s16 }
 0x12a   : > { %s1124_s16 = smov %s1126_s19  ;;  %15 = sbr.rel (!%p13_p8) target bundleno = 4 (0x4), region = 73 }
 0x12f   :  { %580 = vsyncpa [#allocation3], 1 }
 0x130   :  { %582 = vsyncpa [#allocation3 + $0x1], 1 }

</bundles_post_ra>
